<compile_context>
chip_gen: v7x
topology: tpu7x:2x2x1
jax: 0.10.0
libtpu: 0.0.40
codegen_flags: <defaults>
</compile_context>

<pallas_src>
import jax
import jax.numpy as jnp
from jax.experimental import pallas as pl
from jax.experimental.pallas import tpu as pltpu


# ------------------------------ Fused kernel ------------------------------- #

def _ff_fused_kernel(x_ref, w1_ref, b1_ref, w2_ref, b2_ref, w3_ref, b3_ref, o_ref):
    # Entire FF forward in one kernel; intermediates live in vregs.
    x = x_ref[...]                                                       # (Bp, K)
    h1 = jnp.dot(x, w1_ref[...], preferred_element_type=jnp.float32) + b1_ref[...]
    h1 = jnp.maximum(h1, 0.0)                                            # relu(fc1)
    h2 = jnp.dot(h1, w2_ref[...], preferred_element_type=jnp.float32) + b2_ref[...]
    h2 = jnp.maximum(h2, 0.0)                                            # relu(fc2)
    # fc3: only the live output column (padded to 128 lanes -> unmasked store)
    o_ref[...] = jnp.dot(h2, w3_ref[...], preferred_element_type=jnp.float32) + b3_ref[...]


def ff_forward(x, params, *, lane_pad=128):
    """x: (batch, seq_length, input_dim) -> (batch,)  (== PyTorch FF.forward)."""
    B = x.shape[0]
    xf = x.reshape(B, -1).astype(jnp.float32)        # x.view(B, -1)
    K = xf.shape[1]
    H = params["fc1_w"].shape[0]

    # Pad batch rows up to a multiple of 8 (sublane group); sliced off below.
    Bp = max(8, ((B + 7) // 8) * 8)
    if Bp != B:
        xf = jnp.pad(xf, ((0, Bp - B), (0, 0)))

    # Pre-transpose weights once on the host/XLA side: (K, Nout) layout.
    w1t = jnp.asarray(params["fc1_w"]).T              # (K, H)
    w2t = jnp.asarray(params["fc2_w"]).T              # (H, H)
    b1 = jnp.asarray(params["fc1_b"]).reshape(1, H)
    b2 = jnp.asarray(params["fc2_b"]).reshape(1, H)

    # Module returns y[:, 0] -> only fc3 row 0 is live.  Pad its single output
    # column with zeros up to `lane_pad` lanes so the kernel's store is dense.
    w3_live = jnp.asarray(params["fc3_w"])[0:1, :].T  # (H, 1)
    b3_live = jnp.asarray(params["fc3_b"])[0:1].reshape(1, 1)
    w3t = jnp.pad(w3_live, ((0, 0), (0, lane_pad - 1)))   # (H, lane_pad)
    b3 = jnp.pad(b3_live, ((0, 0), (0, lane_pad - 1)))    # (1, lane_pad)

    def full(shape):
        return pl.BlockSpec(shape, lambda i, _s=shape: (0,) * len(_s))

    y = pl.pallas_call(
        _ff_fused_kernel,
        out_shape=jax.ShapeDtypeStruct((Bp, lane_pad), jnp.float32),
        grid=(1,),
        in_specs=[full((Bp, K)),
                  full((K, H)), full((1, H)),
                  full((H, H)), full((1, H)),
                  full((H, lane_pad)), full((1, lane_pad))],
        out_specs=full((Bp, lane_pad)),
        compiler_params=pltpu.CompilerParams(
            dimension_semantics=("arbitrary",)),
    )(xf, w1t, b1, w2t, b2, w3t, b3)

    return y[:B, 0]                                    # == y[:, 0] of the module


# ------------------------------ Parameter init ----------------------------- #

def init_params(key, input_dim, seq_length, hidden_dim, output_dim=1):
    """PyTorch nn.Linear default init: U(-1/sqrt(fan_in), 1/sqrt(fan_in))."""
    keys = jax.random.split(key, 6)

    def u(k, shape, fan_in):
        bound = 1.0 / (fan_in ** 0.5)
        return jax.random.uniform(k, shape, jnp.float32, -bound, bound)

    K = input_dim * seq_length
    return {
        "fc1_w": u(keys[0], (hidden_dim, K), K),
        "fc1_b": u(keys[1], (hidden_dim,), K),
        "fc2_w": u(keys[2], (hidden_dim, hidden_dim), hidden_dim),
        "fc2_b": u(keys[3], (hidden_dim,), hidden_dim),
        "fc3_w": u(keys[4], (output_dim, hidden_dim), hidden_dim),
        "fc3_b": u(keys[5], (output_dim,), hidden_dim),
    }


def ff_reference(x, params):
    """Pure-JAX reference of the PyTorch forward (for correctness checking)."""
    B = x.shape[0]
    xf = x.reshape(B, -1).astype(jnp.float32)
    h1 = jnp.maximum(xf @ params["fc1_w"].T + params["fc1_b"], 0.0)
    h2 = jnp.maximum(h1 @ params["fc2_w"].T + params["fc2_b"], 0.0)
    y = h2 @ params["fc3_w"].T + params["fc3_b"]
    return y[:, 0]


# ----------------------------------- Main ----------------------------------- #

if __name__ == "__main__":
    INPUT_DIM = 16
    SEQ_LEN = 8
    HIDDEN_DIM = 32
    OUTPUT_DIM = 1
    BATCH = 8

    key = jax.random.PRNGKey(0)
    kx, kp = jax.random.split(key)
    x = jax.random.normal(kx, (BATCH, SEQ_LEN, INPUT_DIM), jnp.float32)
    params = init_params(kp, INPUT_DIM, SEQ_LEN, HIDDEN_DIM, OUTPUT_DIM)

    out = ff_forward(x, params)
    jax.block_until_ready(out)

    assert out.shape == (BATCH,), out.shape
    ref = ff_reference(x, params)
    assert jnp.allclose(out, ref, atol=1e-5, rtol=1e-5), (out, ref)
    print("KERNEL_OK")
</pallas_src>

<mosaic_0001>
module attributes {stable_mosaic.version = 11 : i64} {
  func.func @_ff_fused_kernel(%arg0: i32, %arg1: memref<8x128xf32, #tpu.memory_space<vmem>>, %arg2: memref<128x32xf32, #tpu.memory_space<vmem>>, %arg3: memref<1x32xf32, #tpu.memory_space<vmem>>, %arg4: memref<32x32xf32, #tpu.memory_space<vmem>>, %arg5: memref<1x32xf32, #tpu.memory_space<vmem>>, %arg6: memref<32x128xf32, #tpu.memory_space<vmem>>, %arg7: memref<1x128xf32, #tpu.memory_space<vmem>>, %arg8: memref<8x128xf32, #tpu.memory_space<vmem>>) attributes {dimension_semantics = [#tpu.dimension_semantics<arbitrary>], iteration_bounds = array<i64: 1>, scalar_prefetch = 0 : i64, scratch_operands = 0 : i64, tpu.core_type = #tpu.core_type<tc>, window_params = [{pipeline_mode = #tpu.pipeline_mode<synchronous>, transform_indices = @transform_0, window_bounds = array<i64: 8, 128>}, {pipeline_mode = #tpu.pipeline_mode<synchronous>, transform_indices = @transform_1, window_bounds = array<i64: 128, 32>}, {pipeline_mode = #tpu.pipeline_mode<synchronous>, transform_indices = @transform_2, window_bounds = array<i64: 1, 32>}, {pipeline_mode = #tpu.pipeline_mode<synchronous>, transform_indices = @transform_3, window_bounds = array<i64: 32, 32>}, {pipeline_mode = #tpu.pipeline_mode<synchronous>, transform_indices = @transform_4, window_bounds = array<i64: 1, 32>}, {pipeline_mode = #tpu.pipeline_mode<synchronous>, transform_indices = @transform_5, window_bounds = array<i64: 32, 128>}, {pipeline_mode = #tpu.pipeline_mode<synchronous>, transform_indices = @transform_6, window_bounds = array<i64: 1, 128>}, {pipeline_mode = #tpu.pipeline_mode<synchronous>, transform_indices = @transform_7, window_bounds = array<i64: 8, 128>}]} {
    %c0 = arith.constant 0 : index
    %c0_0 = arith.constant 0 : index
    %0 = vector.load %arg1[%c0, %c0_0] : memref<8x128xf32, #tpu.memory_space<vmem>>, vector<8x128xf32>
    %c0_1 = arith.constant 0 : index
    %c0_2 = arith.constant 0 : index
    %1 = vector.load %arg2[%c0_1, %c0_2] : memref<128x32xf32, #tpu.memory_space<vmem>>, vector<128x32xf32>
    %cst = arith.constant dense<0.000000e+00> : vector<8x32xf32>
    %2 = tpu.matmul %0, %1, %cst {dimension_numbers = #tpu.dot_dimension_numbers<[1], [0], [0], [1], [0, 0, 1, 1], [], []>} : vector<8x128xf32>, vector<128x32xf32>, vector<8x32xf32> -> vector<8x32xf32>
    %c0_3 = arith.constant 0 : index
    %c0_4 = arith.constant 0 : index
    %3 = vector.load %arg3[%c0_3, %c0_4] : memref<1x32xf32, #tpu.memory_space<vmem>>, vector<1x32xf32>
    %4 = vector.broadcast %3 : vector<1x32xf32> to vector<8x32xf32>
    %5 = arith.addf %2, %4 : vector<8x32xf32>
    %cst_5 = arith.constant 0.000000e+00 : f32
    %6 = vector.broadcast %cst_5 : f32 to vector<8x32xf32>
    %7 = arith.maximumf %5, %6 : vector<8x32xf32>
    %c0_6 = arith.constant 0 : index
    %c0_7 = arith.constant 0 : index
    %8 = vector.load %arg4[%c0_6, %c0_7] : memref<32x32xf32, #tpu.memory_space<vmem>>, vector<32x32xf32>
    %cst_8 = arith.constant dense<0.000000e+00> : vector<8x32xf32>
    %9 = tpu.matmul %7, %8, %cst_8 {dimension_numbers = #tpu.dot_dimension_numbers<[1], [0], [0], [1], [0, 0, 1, 1], [], []>} : vector<8x32xf32>, vector<32x32xf32>, vector<8x32xf32> -> vector<8x32xf32>
    %c0_9 = arith.constant 0 : index
    %c0_10 = arith.constant 0 : index
    %10 = vector.load %arg5[%c0_9, %c0_10] : memref<1x32xf32, #tpu.memory_space<vmem>>, vector<1x32xf32>
    %11 = vector.broadcast %10 : vector<1x32xf32> to vector<8x32xf32>
    %12 = arith.addf %9, %11 : vector<8x32xf32>
    %cst_11 = arith.constant 0.000000e+00 : f32
    %13 = vector.broadcast %cst_11 : f32 to vector<8x32xf32>
    %14 = arith.maximumf %12, %13 : vector<8x32xf32>
    %c0_12 = arith.constant 0 : index
    %c0_13 = arith.constant 0 : index
    %15 = vector.load %arg6[%c0_12, %c0_13] : memref<32x128xf32, #tpu.memory_space<vmem>>, vector<32x128xf32>
    %cst_14 = arith.constant dense<0.000000e+00> : vector<8x128xf32>
    %16 = tpu.matmul %14, %15, %cst_14 {dimension_numbers = #tpu.dot_dimension_numbers<[1], [0], [0], [1], [0, 0, 1, 1], [], []>} : vector<8x32xf32>, vector<32x128xf32>, vector<8x128xf32> -> vector<8x128xf32>
    %c0_15 = arith.constant 0 : index
    %c0_16 = arith.constant 0 : index
    %17 = vector.load %arg7[%c0_15, %c0_16] : memref<1x128xf32, #tpu.memory_space<vmem>>, vector<1x128xf32>
    %18 = vector.broadcast %17 : vector<1x128xf32> to vector<8x128xf32>
    %19 = arith.addf %16, %18 : vector<8x128xf32>
    %c0_17 = arith.constant 0 : index
    %c0_18 = arith.constant 0 : index
    %20 = vector.load %arg8[%c0_17, %c0_18] : memref<8x128xf32, #tpu.memory_space<vmem>>, vector<8x128xf32>
    tpu.vector_store %arg8[%c0_17, %c0_18], %19 {strides = array<i32>} : memref<8x128xf32, #tpu.memory_space<vmem>>, vector<8x128xf32>,
    return
  }
  func.func @transform_0(%arg0: i32) -> (i32, i32) {
    %c0_i32 = arith.constant 0 : i32
    %c0_i32_0 = arith.constant 0 : i32
    %c0_i32_1 = arith.constant 0 : i32
    return %c0_i32, %c0_i32_0 : i32, i32
  }
  func.func @transform_1(%arg0: i32) -> (i32, i32) {
    %c0_i32 = arith.constant 0 : i32
    %c0_i32_0 = arith.constant 0 : i32
    %c0_i32_1 = arith.constant 0 : i32
    return %c0_i32, %c0_i32_0 : i32, i32
  }
  func.func @transform_2(%arg0: i32) -> (i32, i32) {
    %c0_i32 = arith.constant 0 : i32
    %c0_i32_0 = arith.constant 0 : i32
    %c0_i32_1 = arith.constant 0 : i32
    return %c0_i32, %c0_i32_0 : i32, i32
  }
  func.func @transform_3(%arg0: i32) -> (i32, i32) {
    %c0_i32 = arith.constant 0 : i32
    %c0_i32_0 = arith.constant 0 : i32
    %c0_i32_1 = arith.constant 0 : i32
    return %c0_i32, %c0_i32_0 : i32, i32
  }
  func.func @transform_4(%arg0: i32) -> (i32, i32) {
    %c0_i32 = arith.constant 0 : i32
    %c0_i32_0 = arith.constant 0 : i32
    %c0_i32_1 = arith.constant 0 : i32
    return %c0_i32, %c0_i32_0 : i32, i32
  }
  func.func @transform_5(%arg0: i32) -> (i32, i32) {
    %c0_i32 = arith.constant 0 : i32
    %c0_i32_0 = arith.constant 0 : i32
    %c0_i32_1 = arith.constant 0 : i32
    return %c0_i32, %c0_i32_0 : i32, i32
  }
  func.func @transform_6(%arg0: i32) -> (i32, i32) {
    %c0_i32 = arith.constant 0 : i32
    %c0_i32_0 = arith.constant 0 : i32
    %c0_i32_1 = arith.constant 0 : i32
    return %c0_i32, %c0_i32_0 : i32, i32
  }
  func.func @transform_7(%arg0: i32) -> (i32, i32) {
    %c0_i32 = arith.constant 0 : i32
    %c0_i32_0 = arith.constant 0 : i32
    %c0_i32_1 = arith.constant 0 : i32
    return %c0_i32, %c0_i32_0 : i32, i32
  }
}

</mosaic_0001>

<bundles_post_ra>
// kernel: tpu_custom_call.1
= control target key start
LH: loop header
LB: loop body
LE: loop exit
PB: predicated region body
PF: predicated region fallthrough
CT: control target
= control target key end

     0   :  { %v460_v3 = vmov 0.0|0.0   ;;  %vm461_vm0 = vmmov 0   ;;  %v462_v6 = vmov 0.0   ;;  %s617_s0 = inlined_call_operand.vmem [shape: f32[8,128], index: 0, kind: input, shape index: {}]   ;;  %s618_s1 = inlined_call_operand.vmem [shape: f32[128,32], index: 1, kind: input, shape index: {}]   ;;  %s619_s2 = inlined_call_operand.vmem [shape: f32[1,32], index: 2, kind: input, shape index: {}]   ;;  %s620_s3 = inlined_call_operand.vmem [shape: f32[32,32], index: 3, kind: input, shape index: {}]   ;;  %s621_s4 = inlined_call_operand.vmem [shape: f32[1,32], index: 4, kind: input, shape index: {}]   ;;  %s622_s5 = inlined_call_operand.vmem [shape: f32[32,128], index: 5, kind: input, shape index: {}]   ;;  %s623_s6 = inlined_call_operand.vmem [shape: f32[1,128], index: 6, kind: input, shape index: {}]   ;;  %s624_s7 = inlined_call_operand.hbm [shape: f32[8,128], index: 7, kind: output, shape index: {}]  }
   0x1   :  { %v28_v0 = vld [vmem:[%s618_s1] sm:$0xff]  ;;  %v29_v1 = vld [vmem:[%s618_s1 + $0x8] sm:$0xff]  ;;  %v30_v2 = vld [vmem:[%s618_s1 + $0x10] sm:$0xff]  ;;  %396 = vmatprep.subr.bf16.mxu0 %v460_v3  ;;  %371 = vmatprep.mubr.msk.f32.mxu0 %vm461_vm0, %v462_v6 }
   0x2   :  { %v397_v4 = vpack.c.bf16 %v29_v1, %v28_v0  ;;  %v31_v5 = vld [vmem:[%s618_s1 + $0x18] sm:$0xff]  ;;  %420 = vmatprep.subr.bf16.mxu1 %v460_v3  ;;  %382 = vmatprep.mubr.msk.f32.mxu1 %vm461_vm0, %v462_v6  ;;  %v32_v8 = vld [vmem:[%s618_s1 + $0x20] sm:$0xff]  ;;  %v33_v9 = vld [vmem:[%s618_s1 + $0x28] sm:$0xff] }
   0x3   :  { %v400_v7 = vpack.c.bf16 %v31_v5, %v30_v2  ;;  %v122_v10 = vld [vmem:[%s620_s3] sm:$0xff]  ;;  %v123_v11 = vld [vmem:[%s620_s3 + $0x8] sm:$0xff] }
   0x4   :  { %398 = vmatpush3.bf16.msra.mxu0 %v397_v4 }
   0x5   :  { %399 = vmatprep.subr.bf16.mxu0 %v460_v3 }
   0x6   :  { %12 = vsyncpa [#allocation3], 0  ;;  %v403_v12 = vpack.c.bf16 %v33_v9, %v32_v8  ;;  %v421_v13 = vpack.c.bf16 %v123_v11, %v122_v10  ;;  %v34_v14 = vld [vmem:[%s618_s1 + $0x30] sm:$0xff]  ;;  %v35_v15 = vld [vmem:[%s618_s1 + $0x38] sm:$0xff]  ;;  %vm133_vm1 = vcmask 261120   ;;  %s463_s30 = smov [#allocation2]  }
   0x7   :  { %v406_v16 = vpack.c.bf16 %v35_v15, %v34_v14  ;;  %v36_v17 = vld [vmem:[%s618_s1 + $0x40] sm:$0xff]  ;;  %v37_v18 = vld [vmem:[%s618_s1 + $0x48] sm:$0xff]  ;;  %v38_v20 = vld [vmem:[%s618_s1 + $0x50] sm:$0xff]  ;;  %s299_s8 = sshll.u32 %s463_s30, 4  ;;  %s300_s8 = int_to_ptr.vmem [resolvable:$true] %s299_s8 }
   0x8   :  { %401 = vmatpush3.bf16.msra.mxu0 %v400_v7  ;;  %422 = vmatpush3.bf16.msra.mxu1 %v421_v13  ;;  %v409_v19 = vpack.c.bf16 %v37_v18, %v36_v17  ;;  %v39_v21 = vld [vmem:[%s618_s1 + $0x58] sm:$0xff]  ;;  %v40_v23 = vld [vmem:[%s618_s1 + $0x60] sm:$0xff]  ;;  %v41_v24 = vld [vmem:[%s618_s1 + $0x68] sm:$0xff]  ;;  %p441_p1 = scmp.lt.s32.totalorder %s300_s8, %s300_s8 }
   0x9   :  { %402 = vmatprep.subr.bf16.mxu0 %v460_v3  ;;  %423 = vmatprep.subr.bf16.mxu1 %v460_v3  ;;  %v412_v22 = vpack.c.bf16 %v39_v21, %v38_v20  ;;  %v415_v25 = vpack.c.bf16 %v41_v24, %v40_v23  ;;  %v42_v26 = vld [vmem:[%s618_s1 + $0x70] sm:$0xff]  ;;  %v43_v27 = vld [vmem:[%s618_s1 + $0x78] sm:$0xff]  ;;  %v27_v29 = vld [vmem:[%s617_s0] sm:$0xff] }
   0xa   :  { %v418_v28 = vpack.c.bf16 %v43_v27, %v42_v26  ;;  %v124_v30 = vld [vmem:[%s620_s3 + $0x10] sm:$0xff]  ;;  %v125_v31 = vld [vmem:[%s620_s3 + $0x18] sm:$0xff]  ;;  %v307_v33 = vld [vmem:[%s619_s2] ss:$0 sm:$0xff] }
   0xb   :  { %v424_v32 = vpack.c.bf16 %v125_v31, %v124_v30  ;;  %v208_v34 = vld [vmem:[%s622_s5] sm:$0xff]  ;;  %v209_v35 = vld [vmem:[%s622_s5 + $0x8] sm:$0xff]  ;;  %v210_v41 = vld [vmem:[%s622_s5 + $0x10] sm:$0xff] }
   0xc   :  { %404 = vmatpush3.bf16.msra.mxu0 %v403_v12  ;;  %v427_v39 = vpack.c.bf16 %v209_v35, %v208_v34  ;;  %v211_v42 = vld [vmem:[%s622_s5 + $0x18] sm:$0xff]  ;;  %v308_v44 = vld [vmem:[%s621_s4] ss:$0 sm:$0xff]  ;;  %s436_s5 = scalar_lea.vmem %s300_s8, 128 }
   0xd   :  { %405 = vmatprep.subr.bf16.mxu0 %v460_v3  ;;  %425 = vmatpush3.bf16.msra.mxu1 %v424_v32  ;;  %v430_v43 = vpack.c.bf16 %v211_v42, %v210_v41  ;;  %v310_v49 = vld [vmem:[%s623_s6] ss:$0 sm:$0xff]  ;;  %p437_p0 = scmp.ne.s32.totalorder %s300_s8, %s436_s5  ;;  %p442_p2 = scmp.lt.s32.totalorder %s436_s5, %s436_s5 }
   0xe   :  { %426 = vmatprep.subr.bf16.mxu1 %v460_v3 }
   0xf   :  { %p443_p3 = por %p442_p2, %p441_p1 }
  0x10   :  { %407 = vmatpush3.bf16.msra.mxu0 %v406_v16 }
  0x11   :  { %408 = vmatprep.subr.bf16.mxu0 %v460_v3  ;;  %p444_p4 = pnand %p443_p3, %p437_p0 }
  0x14   :  { %410 = vmatpush3.bf16.msra.mxu0 %v409_v19 }
  0x15   :  { %411 = vmatprep.subr.bf16.mxu0 %v460_v3 }
  0x18   :  { %413 = vmatpush3.bf16.msra.mxu0 %v412_v22 }
  0x19   :  { %414 = vmatprep.subr.bf16.mxu0 %v460_v3 }
  0x1c   :  { %416 = vmatpush3.bf16.msra.mxu0 %v415_v25 }
  0x1d   :  { %417 = vmatprep.subr.bf16.mxu0 %v460_v3 }
  0x20   :  { %419 = vmatpush3.bf16.msra.mxu0 %v418_v28 }
  0x23   :  { %372 = vmatmul.mubr.f32.vlgmr.msra.gmra.mrb[0].mxu0 %v27_v29 }
  0xf6   :  { %v117_v36 = vpop.f32.mrb[0].mxu0 }
  0xf7   :  { %v118_v37 = vadd.f32 %v307_v33, %v117_v36  ;;  %v373_v38 = vpop.f32.mrb[1].mxu0 }
  0xf9   :  { %v121_v40 = vmax.f32 %v118_v37, 0.0 }
  0xfb   :  { %383 = vmatmul.mubr.msk.f32.vlgmr.msra.gmra.mrb[0].mxu1 %vm133_vm1, %v121_v40 }
  0xfc   :  { %428 = vmatpush3.bf16.msra.mxu1 %v427_v39  ;;  %393 = vmatprep.mubr.msk.f32.mxu1 %vm461_vm0, %v462_v6 }
  0xfd   :  { %429 = vmatprep.subr.bf16.mxu1 %v460_v3 }
 0x100   :  { %431 = vmatpush3.bf16.msra.mxu1 %v430_v43 }
 0x1ce   :  { %v203_v45 = vpop.f32.mrb[0].mxu1 }
 0x1cf   :  { %v204_v46 = vadd.f32 %v308_v44, %v203_v45  ;;  %v384_v47 = vpop.f32.mrb[1].mxu1 }
 0x1d1   :  { %v207_v48 = vmax.f32 %v204_v46, 0.0 }
 0x1d3   :  { %394 = vmatmul.mubr.msk.f32.vlgmr.msra.gmra.mrb[2].mxu1 %vm133_vm1, %v207_v48 }
 0x2a6   :  { %v288_v50 = vpop.f32.mrb[2].mxu1 }
 0x2a7   :  { %v289_v51 = vadd.f32 %v310_v49, %v288_v50  ;;  %v395_v52 = vpop.f32.mrb[3].mxu1 }
 0x2a9   :  { %292 = vst [vmem:[#allocation2] sm:$0xff] %v289_v51 }
 0x2aa   :  { %447 = shalt.err (!%p444_p4)
}
 0x2ab   :  { %s448_s10 = scalar_lea.hbm %s624_s7, 128 }
 0x2ac   :  { %p449_p5 = scmp.ne.s32.totalorder %s624_s7, %s448_s10  ;;  %p452_p6 = scmp.lt.u32.totalorder %s448_s10, %s624_s7 }
 0x2ae   :  { %p454_p7 = pnand %p452_p6, %p449_p5 }
 0x2b0   :  { %457 = shalt.err (!%p454_p7)
}
 0x2b1   :  { %302 = dma.vmem_to_hbm [thread:$0]  %s300_s8, 128, %s624_s7, [#allocation3]  }
 0x2b2   :  { %458 = dma.done.wait [#allocation3], 128  }
 0x2b3   :  { %459 = vsyncadd [#allocation3], 4294967168 }
 0x2b4   :  { %306 = vsyncpa [#allocation3], 1 }

</bundles_post_ra>
